<compile_context>
chip_gen: v5e
topology: v5e:2x2
jax: 0.10.0
libtpu: 0.0.40
codegen_flags: <defaults>
</compile_context>

<pallas_src>
import functools
import math

import jax
import jax.numpy as jnp
from jax import lax
from jax.experimental import pallas as pl
from jax.experimental.pallas import tpu as pltpu

_VMEM_LIMIT_BYTES = 48 * 1024 * 1024      # scoped-VMEM ceiling (safe on v7x 64 MiB)
_TILE_VMEM_BUDGET = 40 * 1024 * 1024      # budget for the tiled working set


# ---------------------------------------------------------------------------
# Path 1: whole problem resident in VMEM, single kernel invocation (grid=()).
# ---------------------------------------------------------------------------
def _disc_kernel_resident(has_sbias, *refs):
    if has_sbias:
        c_ref, hpl_ref, hmi_ref, w_ref, sb_ref, bias_ref, out_ref = refs
    else:
        c_ref, hpl_ref, hmi_ref, w_ref, bias_ref, out_ref = refs
        sb_ref = None

    # T[b, i] = sum_j W[i, j] * c[b, j]  ->  single batched MXU matmul c @ W^T.
    t = lax.dot_general(
        c_ref[...], w_ref[...],
        dimension_numbers=(((1,), (1,)), ((), ())),
        preferred_element_type=jnp.float32)              # (B, n_h) f32
    t_in = t.astype(hpl_ref.dtype)                       # keep MXU in input dtype

    # Second stage per batch element (B is small and static).  Keep the matmul
    # oriented as t_b @ h_b^T so the output lane dim is N, and store each row
    # directly into the (B, 2, N) output (no concatenates, bounded live ranges).
    B = c_ref.shape[0]
    for b in range(B):
        tb = t_in[b:b + 1, :]                            # (1, n_h)
        s1 = lax.dot_general(
            tb, hpl_ref[b],
            dimension_numbers=(((1,), (1,)), ((), ())),
            preferred_element_type=jnp.float32) + bias_ref[0]   # (1, N)
        s2 = lax.dot_general(
            tb, hmi_ref[b],
            dimension_numbers=(((1,), (1,)), ((), ())),
            preferred_element_type=jnp.float32) + bias_ref[1]   # (1, N)
        if has_sbias:
            s1 = s1 + sb_ref[b, 0:1, :]
            s2 = s2 + sb_ref[b, 1:2, :]
        out_ref[b, 0:1, :] = s1.astype(out_ref.dtype)
        out_ref[b, 1:2, :] = s2.astype(out_ref.dtype)


def _forward_resident(c, h_pl, h_mi, W, bias_vec, sbias):
    B, N, n_h = h_pl.shape
    has_sbias = sbias is not None
    itemsize = jnp.dtype(h_pl.dtype).itemsize
    vmem = pltpu.MemorySpace.VMEM

    in_specs = [
        pl.BlockSpec(memory_space=vmem),    # c     (B, n_h)
        pl.BlockSpec(memory_space=vmem),    # h_pl  (B, N, n_h)
        pl.BlockSpec(memory_space=vmem),    # h_mi  (B, N, n_h)
        pl.BlockSpec(memory_space=vmem),    # W     (n_h, n_h)
    ]
    args = [c, h_pl, h_mi, W]
    if has_sbias:
        in_specs.append(pl.BlockSpec(memory_space=vmem))   # s_bias (B, 2, N) f32
        args.append(sbias)
    in_specs.append(pl.BlockSpec(memory_space=pltpu.MemorySpace.SMEM))  # bias (2,)
    args.append(bias_vec)

    bytes_accessed = ((2 * B * N * n_h + B * n_h + n_h * n_h) * itemsize
                      + B * 2 * N * 4
                      + (B * 2 * N * 4 if has_sbias else 0))
    cost = pl.CostEstimate(flops=int(2 * B * n_h * n_h + 4 * B * N * n_h),
                           transcendentals=0,
                           bytes_accessed=int(bytes_accessed))

    return pl.pallas_call(
        functools.partial(_disc_kernel_resident, has_sbias),
        out_shape=jax.ShapeDtypeStruct((B, 2, N), jnp.float32),
        in_specs=in_specs,
        out_specs=pl.BlockSpec(memory_space=vmem),
        compiler_params=pltpu.CompilerParams(vmem_limit_bytes=_VMEM_LIMIT_BYTES),
        cost_estimate=cost,
    )(*args)


# ---------------------------------------------------------------------------
# Path 2: N-tiled grid for large graphs (h_pl/h_mi stream through VMEM).
# The first stage T = c @ W^T is hoisted to the wrapper; the kernel only does
# the two N-wide, lane-dense matmuls plus the bias adds and direct stores.
# ---------------------------------------------------------------------------
def _disc_kernel_tiled(has_sbias, *refs):
    if has_sbias:
        t_ref, hpl_ref, hmi_ref, sb_ref, bias_ref, out_ref = refs
    else:
        t_ref, hpl_ref, hmi_ref, bias_ref, out_ref = refs
        sb_ref = None

    tb = t_ref[...]                                      # (1, n_h) for this batch

    s1 = lax.dot_general(
        tb, hpl_ref[0],
        dimension_numbers=(((1,), (1,)), ((), ())),
        preferred_element_type=jnp.float32) + bias_ref[0]        # (1, TN)
    s2 = lax.dot_general(
        tb, hmi_ref[0],
        dimension_numbers=(((1,), (1,)), ((), ())),
        preferred_element_type=jnp.float32) + bias_ref[1]        # (1, TN)
    if has_sbias:
        s1 = s1 + sb_ref[0, 0:1, :]
        s2 = s2 + sb_ref[0, 1:2, :]

    # Two direct lane-dense stores; no sublane concat copy per grid step.
    out_ref[0, 0:1, :] = s1.astype(out_ref.dtype)
    out_ref[0, 1:2, :] = s2.astype(out_ref.dtype)


def _pick_n_block(N, n_h, itemsize, has_sbias, budget_bytes):
    """Largest multiple-of-128 node tile whose double-buffered working set fits."""
    per_tn = 4 * n_h * itemsize          # h_pl + h_mi blocks, 2 buffers each
    per_tn += 2 * 2 * 4                   # (1, 2, tn) f32 output, 2 buffers
    if has_sbias:
        per_tn += 2 * 2 * 4               # (1, 2, tn) f32 s_bias, 2 buffers
    tn = max(budget_bytes // per_tn, 128)
    tn = (tn // 128) * 128
    tn = min(tn, pl.cdiv(N, 128) * 128, 8192)
    return max(tn, 128)


def _forward_tiled(t, h_pl, h_mi, bias_vec, sbias, tn):
    B, N, n_h = h_pl.shape
    has_sbias = sbias is not None
    itemsize = jnp.dtype(h_pl.dtype).itemsize
    grid = (B, pl.cdiv(N, tn))

    in_specs = [
        pl.BlockSpec((1, n_h), lambda b, n: (b, 0)),            # T (per batch)
        pl.BlockSpec((1, tn, n_h), lambda b, n: (b, n, 0)),     # h_pl
        pl.BlockSpec((1, tn, n_h), lambda b, n: (b, n, 0)),     # h_mi
    ]
    args = [t, h_pl, h_mi]
    if has_sbias:
        in_specs.append(pl.BlockSpec((1, 2, tn), lambda b, n: (b, 0, n)))  # s_bias
        args.append(sbias)
    in_specs.append(pl.BlockSpec(memory_space=pltpu.MemorySpace.SMEM))     # bias (2,)
    args.append(bias_vec)

    bytes_accessed = (2 * B * N * n_h * itemsize + B * n_h * itemsize
                      + B * 2 * N * 4
                      + (B * 2 * N * 4 if has_sbias else 0))
    cost = pl.CostEstimate(flops=int(4 * B * N * n_h),
                           transcendentals=0,
                           bytes_accessed=int(bytes_accessed))

    out = pl.pallas_call(
        functools.partial(_disc_kernel_tiled, has_sbias),
        out_shape=jax.ShapeDtypeStruct((B, 2, N), jnp.float32),
        grid=grid,
        in_specs=in_specs,
        out_specs=pl.BlockSpec((1, 2, tn), lambda b, n: (b, 0, n)),
        compiler_params=pltpu.CompilerParams(
            dimension_semantics=("parallel", "parallel"),
            vmem_limit_bytes=_VMEM_LIMIT_BYTES),
        cost_estimate=cost,
    )(*args)
    return out


# ---------------------------------------------------------------------------
# Public wrapper (matches Discriminator.forward).
# ---------------------------------------------------------------------------
def discriminator_forward(c, h_pl, h_mi, W, bias, s_bias1=None, s_bias2=None,
                          *, n_block=None,
                          vmem_resident_budget=16 * 1024 * 1024,
                          vmem_tile_budget=_TILE_VMEM_BUDGET):
    """Forward pass of the DGI Discriminator.

    c:    (B, n_h)    summary vector per graph
    h_pl: (B, N, n_h) positive node embeddings
    h_mi: (B, N, n_h) negative (corrupted) node embeddings
    W:    (n_h, n_h)  bilinear weight (PyTorch weight[0])
    bias: (1,)        bilinear bias
    s_bias1/s_bias2: optional scalars (folded into the SMEM bias) or per-node
      tensors broadcastable to (B, N).
    Returns logits of shape (B, 2N) == torch.cat((sc_1, sc_2), dim=1), f32.

    Passing bf16 h/c/W halves the dominant HBM stream on every generation
    (v5e/v6e/v7x); MXU accumulation stays f32.  Note T = c @ W^T is rounded to
    the input dtype before stage 2, a small deviation from fp32 nn.Bilinear.
    """
    B, N, n_h = h_pl.shape
    dtype = h_pl.dtype
    c = jnp.asarray(c, dtype)
    h_mi = jnp.asarray(h_mi, dtype)
    W = jnp.asarray(W, dtype)
    bias0 = jnp.asarray(bias, jnp.float32).reshape(-1)[0]

    # s_bias: scalars fold into the SMEM bias vector; tensors stack as (B, 2, N)
    # so a single (1, 2, tn) block matches the output layout.
    def _split(sb):
        if sb is None:
            return jnp.float32(0.0), None
        sb = jnp.asarray(sb, jnp.float32)
        if sb.ndim == 0:
            return sb, None
        return jnp.float32(0.0), jnp.broadcast_to(sb, (B, N))

    f1, t1 = _split(s_bias1)
    f2, t2 = _split(s_bias2)
    bias_vec = jnp.stack([bias0 + f1, bias0 + f2]).astype(jnp.float32)  # (2,)
    has_sbias = (t1 is not None) or (t2 is not None)
    if has_sbias:
        if t1 is None:
            t1 = jnp.zeros((B, N), jnp.float32)
        if t2 is None:
            t2 = jnp.zeros((B, N), jnp.float32)
        sbias = jnp.stack([t1, t2], axis=1)                              # (B, 2, N)
    else:
        sbias = None

    itemsize = jnp.dtype(dtype).itemsize
    # Inputs + f32 output + in-kernel f32 intermediates (T + per-b rows).
    resident_bytes = ((2 * B * N * n_h + B * n_h + n_h * n_h) * itemsize
                      + 2 * B * 2 * N * 4 + B * n_h * 4
                      + (B * 2 * N * 4 if has_sbias else 0))
    if n_block is None and resident_bytes <= vmem_resident_budget:
        out = _forward_resident(c, h_pl, h_mi, W, bias_vec, sbias)
        return out.reshape(B, 2 * N)

    # Hoisted first stage: T = c @ W^T once (tiny), instead of per grid step.
    t = jnp.einsum("ij,bj->bi", W.astype(jnp.float32), c.astype(jnp.float32))
    t = t.astype(dtype)

    if n_block is None:
        n_block = _pick_n_block(N, n_h, itemsize, has_sbias, vmem_tile_budget)
    out = _forward_tiled(t, h_pl, h_mi, bias_vec, sbias, n_block)
    # (B, 2, N) -> (B, 2N) is a free row-major view and equals torch.cat(dim=1).
    return out.reshape(B, 2 * N)


# ---------------------------------------------------------------------------
# Pure-JAX reference (nn.Bilinear semantics) and self-test.
# ---------------------------------------------------------------------------
def _reference_forward(c, h_pl, h_mi, W, bias, s_bias1=None, s_bias2=None):
    t = jnp.einsum("ij,bj->bi", W, c)                       # (B, n_h)
    sc1 = jnp.einsum("bni,bi->bn", h_pl, t) + bias[0]
    sc2 = jnp.einsum("bni,bi->bn", h_mi, t) + bias[0]
    if s_bias1 is not None:
        sc1 = sc1 + s_bias1
    if s_bias2 is not None:
        sc2 = sc2 + s_bias2
    return jnp.concatenate([sc1, sc2], axis=1)


def _xavier_bilinear(key, n_h):
    fan_in, fan_out = n_h * n_h, 1 * n_h
    bound = math.sqrt(6.0 / (fan_in + fan_out))
    return jax.random.uniform(key, (n_h, n_h), minval=-bound, maxval=bound,
                              dtype=jnp.float32)


if __name__ == "__main__":
    key = jax.random.PRNGKey(0)
    ks = jax.random.split(key, 12)

    # ---- Test 1: small module shapes -> grid-collapsed resident path -------
    B, N, n_h = 2, 8, 32
    c = jax.random.normal(ks[0], (B, n_h), dtype=jnp.float32)
    h_pl = jax.random.normal(ks[1], (B, N, n_h), dtype=jnp.float32)
    h_mi = jax.random.normal(ks[2], (B, N, n_h), dtype=jnp.float32)
    W = _xavier_bilinear(ks[3], n_h)
    bias = jnp.zeros((1,), jnp.float32)          # m.bias.data.fill_(0.0)

    out = jax.block_until_ready(discriminator_forward(c, h_pl, h_mi, W, bias))
    ref = _reference_forward(c, h_pl, h_mi, W, bias)
    assert out.shape == (B, 2 * N), out.shape
    assert jnp.allclose(out, ref, atol=1e-3, rtol=1e-3), (
        f"resident path mismatch: {float(jnp.max(jnp.abs(out - ref)))}")

    # scalar s_bias1 (folded into SMEM bias) + tensor s_bias2
    sb1 = jnp.float32(0.5)
    sb2 = jax.random.normal(ks[4], (B, N), dtype=jnp.float32)
    out_sb = jax.block_until_ready(
        discriminator_forward(c, h_pl, h_mi, W, bias, sb1, sb2))
    ref_sb = _reference_forward(c, h_pl, h_mi, W, bias, sb1, sb2)
    assert jnp.allclose(out_sb, ref_sb, atol=1e-3, rtol=1e-3), (
        f"resident+s_bias mismatch: {float(jnp.max(jnp.abs(out_sb - ref_sb)))}")

    # ---- Test 2: larger graph -> lane-dense N-tiled grid path (T hoisted) --
    B2, N2, n_h2 = 2, 256, 128
    c2 = jax.random.normal(ks[5], (B2, n_h2), dtype=jnp.float32)
    h_pl2 = jax.random.normal(ks[6], (B2, N2, n_h2), dtype=jnp.float32)
    h_mi2 = jax.random.normal(ks[7], (B2, N2, n_h2), dtype=jnp.float32)
    W2 = _xavier_bilinear(ks[8], n_h2)
    bias2 = jnp.full((1,), 0.25, jnp.float32)
    sb1_2 = jax.random.normal(ks[9], (B2, N2), dtype=jnp.float32)
    sb2_2 = jax.random.normal(ks[10], (B2, N2), dtype=jnp.float32)

    out2 = jax.block_until_ready(
        discriminator_forward(c2, h_pl2, h_mi2, W2, bias2, sb1_2, sb2_2,
                              n_block=128))
    ref2 = _reference_forward(c2, h_pl2, h_mi2, W2, bias2, sb1_2, sb2_2)
    assert out2.shape == (B2, 2 * N2), out2.shape
    assert jnp.allclose(out2, ref2, atol=2e-2, rtol=2e-2), (
        f"tiled path mismatch: {float(jnp.max(jnp.abs(out2 - ref2)))}")

    # ---- Test 3: bf16 inputs (recommended on all generations) --------------
    cb = c.astype(jnp.bfloat16)
    hplb = h_pl.astype(jnp.bfloat16)
    hmib = h_mi.astype(jnp.bfloat16)
    Wb = W.astype(jnp.bfloat16)
    out_bf = jax.block_until_ready(discriminator_forward(cb, hplb, hmib, Wb, bias))
    ref_bf = _reference_forward(cb.astype(jnp.float32), hplb.astype(jnp.float32),
                                hmib.astype(jnp.float32), Wb.astype(jnp.float32),
                                bias)
    assert out_bf.shape == (B, 2 * N), out_bf.shape
    assert jnp.allclose(out_bf, ref_bf, atol=1e-1, rtol=1e-1), (
        f"bf16 path mismatch: {float(jnp.max(jnp.abs(out_bf - ref_bf)))}")

    print("KERNEL_OK")
</pallas_src>

<mosaic_0001>
module attributes {stable_mosaic.version = 11 : i64} {
  func.func @_disc_kernel_resident(%arg0: memref<2x32xf32, #tpu.memory_space<vmem>>, %arg1: memref<2x8x32xf32, #tpu.memory_space<vmem>>, %arg2: memref<2x8x32xf32, #tpu.memory_space<vmem>>, %arg3: memref<32x32xf32, #tpu.memory_space<vmem>>, %arg4: memref<2xf32, #tpu.memory_space<smem>>, %arg5: memref<2x2x8xf32, #tpu.memory_space<vmem>>) attributes {dimension_semantics = [], scalar_prefetch = 0 : i64, scratch_operands = 0 : i64, tpu.core_type = #tpu.core_type<tc>} {
    %c0 = arith.constant 0 : index
    %c0_0 = arith.constant 0 : index
    %0 = vector.load %arg0[%c0, %c0_0] : memref<2x32xf32, #tpu.memory_space<vmem>>, vector<2x32xf32>
    %c0_1 = arith.constant 0 : index
    %c0_2 = arith.constant 0 : index
    %1 = vector.load %arg3[%c0_1, %c0_2] : memref<32x32xf32, #tpu.memory_space<vmem>>, vector<32x32xf32>
    %cst = arith.constant dense<0.000000e+00> : vector<2x32xf32>
    %2 = tpu.matmul %0, %1, %cst {dimension_numbers = #tpu.dot_dimension_numbers<[1], [1], [0], [0], [0, 0, 1, 0], [], []>} : vector<2x32xf32>, vector<32x32xf32>, vector<2x32xf32> -> vector<2x32xf32>
    %3 = vector.extract_strided_slice %2 {offsets = [0, 0], sizes = [1, 32], strides = [1, 1]} : vector<2x32xf32> to vector<1x32xf32>
    %c0_3 = arith.constant 0 : index
    %c0_4 = arith.constant 0 : index
    %c0_5 = arith.constant 0 : index
    %4 = vector.load %arg1[%c0_3, %c0_4, %c0_5] : memref<2x8x32xf32, #tpu.memory_space<vmem>>, vector<1x8x32xf32>
    %5 = vector.shape_cast %4 : vector<1x8x32xf32> to vector<8x32xf32>
    %cst_6 = arith.constant dense<0.000000e+00> : vector<1x8xf32>
    %6 = tpu.matmul %3, %5, %cst_6 {dimension_numbers = #tpu.dot_dimension_numbers<[1], [1], [0], [0], [0, 0, 1, 0], [], []>} : vector<1x32xf32>, vector<8x32xf32>, vector<1x8xf32> -> vector<1x8xf32>
    %c0_7 = arith.constant 0 : index
    %7 = memref.load %arg4[%c0_7] : memref<2xf32, #tpu.memory_space<smem>>
    %8 = vector.broadcast %7 : f32 to vector<1x8xf32>
    %9 = arith.addf %6, %8 : vector<1x8xf32>
    %c0_8 = arith.constant 0 : index
    %c0_9 = arith.constant 0 : index
    %c0_10 = arith.constant 0 : index
    %10 = vector.load %arg2[%c0_8, %c0_9, %c0_10] : memref<2x8x32xf32, #tpu.memory_space<vmem>>, vector<1x8x32xf32>
    %11 = vector.shape_cast %10 : vector<1x8x32xf32> to vector<8x32xf32>
    %cst_11 = arith.constant dense<0.000000e+00> : vector<1x8xf32>
    %12 = tpu.matmul %3, %11, %cst_11 {dimension_numbers = #tpu.dot_dimension_numbers<[1], [1], [0], [0], [0, 0, 1, 0], [], []>} : vector<1x32xf32>, vector<8x32xf32>, vector<1x8xf32> -> vector<1x8xf32>
    %c1 = arith.constant 1 : index
    %13 = memref.load %arg4[%c1] : memref<2xf32, #tpu.memory_space<smem>>
    %14 = vector.broadcast %13 : f32 to vector<1x8xf32>
    %15 = arith.addf %12, %14 : vector<1x8xf32>
    %c0_12 = arith.constant 0 : index
    %c0_13 = arith.constant 0 : index
    %c0_14 = arith.constant 0 : index
    %16 = vector.load %arg5[%c0_12, %c0_13, %c0_14] : memref<2x2x8xf32, #tpu.memory_space<vmem>>, vector<1x1x8xf32>
    %17 = vector.shape_cast %16 : vector<1x1x8xf32> to vector<1x8xf32>
    %18 = vector.shape_cast %9 : vector<1x8xf32> to vector<1x1x8xf32>
    tpu.vector_store %arg5[%c0_12, %c0_13, %c0_14], %18 {strides = array<i32>} : memref<2x2x8xf32, #tpu.memory_space<vmem>>, vector<1x1x8xf32>,
    %c0_15 = arith.constant 0 : index
    %c1_16 = arith.constant 1 : index
    %c0_17 = arith.constant 0 : index
    %19 = vector.load %arg5[%c0_15, %c1_16, %c0_17] : memref<2x2x8xf32, #tpu.memory_space<vmem>>, vector<1x1x8xf32>
    %20 = vector.shape_cast %19 : vector<1x1x8xf32> to vector<1x8xf32>
    %21 = vector.shape_cast %15 : vector<1x8xf32> to vector<1x1x8xf32>
    tpu.vector_store %arg5[%c0_15, %c1_16, %c0_17], %21 {strides = array<i32>} : memref<2x2x8xf32, #tpu.memory_space<vmem>>, vector<1x1x8xf32>,
    %22 = vector.extract_strided_slice %2 {offsets = [1, 0], sizes = [1, 32], strides = [1, 1]} : vector<2x32xf32> to vector<1x32xf32>
    %c1_18 = arith.constant 1 : index
    %c0_19 = arith.constant 0 : index
    %c0_20 = arith.constant 0 : index
    %23 = vector.load %arg1[%c1_18, %c0_19, %c0_20] : memref<2x8x32xf32, #tpu.memory_space<vmem>>, vector<1x8x32xf32>
    %24 = vector.shape_cast %23 : vector<1x8x32xf32> to vector<8x32xf32>
    %cst_21 = arith.constant dense<0.000000e+00> : vector<1x8xf32>
    %25 = tpu.matmul %22, %24, %cst_21 {dimension_numbers = #tpu.dot_dimension_numbers<[1], [1], [0], [0], [0, 0, 1, 0], [], []>} : vector<1x32xf32>, vector<8x32xf32>, vector<1x8xf32> -> vector<1x8xf32>
    %c0_22 = arith.constant 0 : index
    %26 = memref.load %arg4[%c0_22] : memref<2xf32, #tpu.memory_space<smem>>
    %27 = vector.broadcast %26 : f32 to vector<1x8xf32>
    %28 = arith.addf %25, %27 : vector<1x8xf32>
    %c1_23 = arith.constant 1 : index
    %c0_24 = arith.constant 0 : index
    %c0_25 = arith.constant 0 : index
    %29 = vector.load %arg2[%c1_23, %c0_24, %c0_25] : memref<2x8x32xf32, #tpu.memory_space<vmem>>, vector<1x8x32xf32>
    %30 = vector.shape_cast %29 : vector<1x8x32xf32> to vector<8x32xf32>
    %cst_26 = arith.constant dense<0.000000e+00> : vector<1x8xf32>
    %31 = tpu.matmul %22, %30, %cst_26 {dimension_numbers = #tpu.dot_dimension_numbers<[1], [1], [0], [0], [0, 0, 1, 0], [], []>} : vector<1x32xf32>, vector<8x32xf32>, vector<1x8xf32> -> vector<1x8xf32>
    %c1_27 = arith.constant 1 : index
    %32 = memref.load %arg4[%c1_27] : memref<2xf32, #tpu.memory_space<smem>>
    %33 = vector.broadcast %32 : f32 to vector<1x8xf32>
    %34 = arith.addf %31, %33 : vector<1x8xf32>
    %c1_28 = arith.constant 1 : index
    %c0_29 = arith.constant 0 : index
    %c0_30 = arith.constant 0 : index
    %35 = vector.load %arg5[%c1_28, %c0_29, %c0_30] : memref<2x2x8xf32, #tpu.memory_space<vmem>>, vector<1x1x8xf32>
    %36 = vector.shape_cast %35 : vector<1x1x8xf32> to vector<1x8xf32>
    %37 = vector.shape_cast %28 : vector<1x8xf32> to vector<1x1x8xf32>
    tpu.vector_store %arg5[%c1_28, %c0_29, %c0_30], %37 {strides = array<i32>} : memref<2x2x8xf32, #tpu.memory_space<vmem>>, vector<1x1x8xf32>,
    %c1_31 = arith.constant 1 : index
    %c1_32 = arith.constant 1 : index
    %c0_33 = arith.constant 0 : index
    %38 = vector.load %arg5[%c1_31, %c1_32, %c0_33] : memref<2x2x8xf32, #tpu.memory_space<vmem>>, vector<1x1x8xf32>
    %39 = vector.shape_cast %38 : vector<1x1x8xf32> to vector<1x8xf32>
    %40 = vector.shape_cast %34 : vector<1x8xf32> to vector<1x1x8xf32>
    tpu.vector_store %arg5[%c1_31, %c1_32, %c0_33], %40 {strides = array<i32>} : memref<2x2x8xf32, #tpu.memory_space<vmem>>, vector<1x1x8xf32>,
    return
  }
}

</mosaic_0001>

<bundles_post_ra>
// kernel: tpu_custom_call.1
= control target key start
LH: loop header
LB: loop body
LE: loop exit
PB: predicated region body
PF: predicated region fallthrough
CT: control target
= control target key end

     0   :  { %10 = vsyncpa [#allocation3], 0  ;;  %s518_s0 = inlined_call_operand.hbm [shape: f32[2,32], index: 0, kind: input, shape index: {}]   ;;  %s519_s1 = inlined_call_operand.hbm [shape: f32[2,8,32], index: 1, kind: input, shape index: {}]   ;;  %s520_s2 = inlined_call_operand.hbm [shape: f32[2,8,32], index: 2, kind: input, shape index: {}]   ;;  %s521_s3 = inlined_call_operand.hbm [shape: f32[32,32], index: 3, kind: input, shape index: {}]   ;;  %s522_s4 = inlined_call_operand.vmem [shape: f32[2], index: 4, kind: input, shape index: {}]   ;;  %s523_s5 = inlined_call_operand.hbm [shape: f32[2,2,8], index: 5, kind: output, shape index: {}]  }
   0x1   :  { %11 = vsyncpa [#allocation7], 0 }
   0x2   :  { %12 = vsyncpa [#allocation10], 0 }
   0x3   :  { %13 = vsyncpa [#allocation5], 0  ;;  %s30_s20 = sshll.u32 %s519_s1, 4  ;;  %s31_s20 = int_to_ptr.hbm [resolvable:$true] %s30_s20 }
   0x4   :  { %14 = vsyncpa [#allocation4], 0  ;;  %s443_s21 = smov [#allocation6]   ;;  %s20_s25 = sshll.u32 %s518_s0, 4  ;;  %s21_s25 = int_to_ptr.hbm [resolvable:$true] %s20_s25 }
   0x5   :  { %s32_s22 = sshll.u32 %s443_s21, 4  ;;  %s444_s26 = smov 128   ;;  %s33_s22 = int_to_ptr.vmem [resolvable:$true] %s32_s22 }
   0x6   :  { %s445_s27 = smov 8   ;;  %s446_s28 = smov [#allocation2]  }
   0x7   :  { %38 = dma.hbm_to_vmem [thread:$0]  %s31_s20, 256, %s33_s22, [#allocation7], %s444_s26, %s444_s26, %s445_s27  }
   0x8   :  { %s22_s29 = sshll.u32 %s446_s28, 4  ;;  %s43_s7 = sshll.u32 %s520_s2, 4  ;;  %s23_s29 = int_to_ptr.vmem [resolvable:$true] %s22_s29  ;;  %s44_s7 = int_to_ptr.hbm [resolvable:$true] %s43_s7 }
   0x9   :  { %25 = dma.hbm_to_vmem [thread:$0]  %s21_s25, 32, %s23_s29, [#allocation3]  }
   0xa   :  { %s56_s9 = sshll.u32 %s521_s3, 4  ;;  %s447_s10 = smov [#allocation8]   ;;  %s57_s9 = int_to_ptr.hbm [resolvable:$true] %s56_s9 }
   0xb   :  { %s45_s11 = sshll.u32 %s447_s10, 4  ;;  %s448_s0 = smov [#allocation9]   ;;  %s46_s11 = int_to_ptr.vmem [resolvable:$true] %s45_s11 }
   0xc   :  { %51 = dma.hbm_to_vmem [thread:$0]  %s44_s7, 256, %s46_s11, [#allocation7], %s444_s26, %s444_s26, %s445_s27  }
   0xd   :  { %s58_s12 = sshll.u32 %s448_s0, 4  ;;  %s70_s15 = sshll.u32 %s522_s4, 4  ;;  %s59_s12 = int_to_ptr.vmem [resolvable:$true] %s58_s12  ;;  %s71_s15 = int_to_ptr.vmem [resolvable:$true] %s70_s15 }
   0xe   :  { %64 = dma.hbm_to_vmem [thread:$0]  %s57_s9, 512, %s59_s12, [#allocation10], %s444_s26, %s444_s26, %s445_s27  }
   0xf   :  { %s449_s2 = smov [#allocation11]  }
  0x10   :  { %73 = dma.vmem_to_smem %s71_s15, 16, %s449_s2, [#allocation5]  }
  0x11   :  { %433 = dma.done.wait [#allocation3], 32  }
  0x12   :  { %434 = vsyncadd [#allocation3], 4294967264 }
  0x13   :  { %435 = dma.done.wait [#allocation7], 512  }
  0x14   :  { %436 = vsyncadd [#allocation7], 4294966784 }
  0x15   :  { %437 = dma.done.wait [#allocation10], 512  }
  0x16   :  { %438 = vsyncadd [#allocation10], 4294966784 }
  0x17   :  { %439 = dma.done.wait [#allocation5], 16  }
  0x18   :  { %440 = vsyncadd [#allocation5], 4294967280 }
  0x19   :  { %94 = sfence }
  0x1a   :  { %v99_v0 = vld [vmem:[#allocation9 + $0x18] sm:$0xff]  ;;  %vm100_vm0 = vcmask 261120   ;;  %v136_v1 = vld [vmem:[#allocation6] sm:$0xff]  ;;  %v98_v2 = vld [vmem:[#allocation9 + $0x10] sm:$0xff]  ;;  %s137_s3 = sld [smem:[#allocation11]]  ;;  %vm191_vm1 = vcmask 57344  }
  0x1b   :  { %276 = vmatpush.xpose.msk.msra.mxu0 %vm100_vm0, %v99_v0  ;;  %281 = vmatpush.xpose.msk.msra.mxu1 %vm100_vm0, %v136_v1  ;;  %v165_v3 = vld [vmem:[#allocation8] sm:$0xff]  ;;  %v97_v4 = vld [vmem:[#allocation9 + $0x8] sm:$0xff]  ;;  %v96_v5 = vld [vmem:[#allocation9] sm:$0xff]  ;;  %s283_s4 = sld [smem:[#allocation11 + $0x1]]  ;;  %s450_s16 = smov [#allocation12]  }
  0x1c   :  { %284 = vmatpush.xpose.msk.msra.mxu2 %vm100_vm0, %v165_v3  ;;  %v95_v6 = vld [vmem:[#allocation2] sm:$0x3]  ;;  %v195_v7 = vld [vmem:[#allocation6 + $0x8] sm:$0xff]  ;;  %s258_s17 = sshll.u32 %s450_s16, 4  ;;  %s260_s20 = sshll.u32 %s523_s5, 4  ;;  %s259_s17 = int_to_ptr.vmem [resolvable:$true] %s258_s17  ;;  %s261_s20 = int_to_ptr.hbm [resolvable:$true] %s260_s20 }
  0x1d   :  { %286 = vmatpush.xpose.msk.msra.mxu3 %vm100_vm0, %v195_v7  ;;  %v225_v8 = vld [vmem:[#allocation8 + $0x8] sm:$0xff]  ;;  %s451_s21 = smov 32   ;;  %s452_s22 = smov 2  }
  0x1f   :  { %277 = vmatpush.xpose.msk.msra.mxu0 %vm100_vm0, %v98_v2  ;;  %289 = vmatpush.xpose.msk.msrb.mxu1 %vm100_vm0, %v225_v8 }
  0x20   :  { %v138_v11 = vstv %s137_s3 }
  0x21   :  { %v167_v14 = vstv %s283_s4 }
  0x23   :  { %278 = vmatpush.xpose.msk.msra.mxu0 %vm100_vm0, %v97_v4 }
  0x27   :  { %279 = vmatpush.xpose.msk.msra.mxu0 %vm100_vm0, %v96_v5 }
  0x2a   :  { %280 = vmatmul.msk.f32.vlgmr.msra.gmra.mxu0 %vm100_vm0, %v95_v6 }
  0xa7   :  { %v133_v9 = vpop.f32.mrf.mxu0 }
  0xa8   :  { %v198_v10 = vrot.slane %v133_v9, 1  ;;  %282 = vmatmul.msk.f32.vlgmr.msra.gmra.mxu1 %vm100_vm0, %v133_v9  ;;  %285 = vmatmul.msk.f32.vlgmr.msra.gmra.mxu2 %vm100_vm0, %v133_v9 }
  0xaa   :  { %287 = vmatmul.msk.f32.vlgmr.msra.gmra.mxu3 %vm100_vm0, %v198_v10 }
  0xb0   :  { %290 = vmatmul.msk.f32.vlgmr.msrb.gmra.mxu1 %vm100_vm0, %v198_v10 }
 0x125   :  { %v162_v12 = vpop.f32.mrf.mxu1 }
 0x126   :  { %v163_v13 = vadd.f32 %v162_v12, %v138_v11 }
 0x128   :  { %192 = vst.msk [vmem:[#allocation12] sm:$0x1] %vm191_vm1, %v163_v13 }
 0x12b   :  { %v188_v15 = vpop.f32.mrf.mxu2 }
 0x12c   :  { %v189_v16 = vadd.f32 %v188_v15, %v167_v14 }
 0x12d   :  { %v221_v17 = vpop.f32.mrf.mxu3  ;;  %v248_v18 = vpop.f32.mrf.mxu1 }
 0x12e   :  { %193 = vst.msk [vmem:[#allocation12 + $0x1] sm:$0x1] %vm191_vm1, %v189_v16  ;;  %v222_v19 = vadd.f32 %v221_v17, %v138_v11  ;;  %v249_v20 = vadd.f32 %v248_v18, %v167_v14 }
 0x130   :  { %252 = vst.msk [vmem:[#allocation12 + $0x2] sm:$0x1] %vm191_vm1, %v222_v19 }
 0x131   :  { %253 = vst.msk [vmem:[#allocation12 + $0x3] sm:$0x1] %vm191_vm1, %v249_v20 }
 0x132   :  { %266 = dma.vmem_to_hbm [thread:$0]  %s259_s17, 64, %s261_s20, [#allocation4], %s451_s21, %s451_s21, %s452_s22  }
 0x133   :  { %441 = dma.done.wait [#allocation4], 64  }
 0x134   :  { %442 = vsyncadd [#allocation4], 4294967232 }
 0x135   :  { %271 = vsyncpa [#allocation3], 1 }
 0x136   :  { %272 = vsyncpa [#allocation7], 1 }
 0x137   :  { %273 = vsyncpa [#allocation10], 1 }
 0x138   :  { %274 = vsyncpa [#allocation4], 1 }
 0x139   :  { %275 = vsyncpa [#allocation5], 1 }

</bundles_post_ra>
